<compile_context>
chip_gen: v6e
topology: v6e:2x2x1
jax: 0.10.0
libtpu: 0.0.40
codegen_flags: <defaults>
</compile_context>

<pallas_src>
import functools

import jax
import jax.numpy as jnp
import numpy as np
from jax import lax
from jax.experimental import pallas as pl
from jax.experimental.pallas import tpu as pltpu


# ----------------------------- in-kernel compute helpers -----------------------------

def _dot_bf16(a, b):
    """(M,K)@(K,N) on the MXU: bf16 operands, f32 accumulation (single pass)."""
    return lax.dot_general(a.astype(jnp.bfloat16), b.astype(jnp.bfloat16),
                           (((1,), (0,)), ((), ())),
                           preferred_element_type=jnp.float32)


def _dw3x3(x, k9, m, H, W):
    """Depthwise 3x3, stride 1, padding 1, f32 on the VPU, roll-based (no pad scratch).

    x : (C, P) f32, channels on sublanes, flat spatial P=H*W on lanes.
    k9: (C, 9) f32, column index = (dh+1)*3 + (dw+1)  (PyTorch kh,kw order).
    m : (4, P) f32 boundary masks: [w>0, w<W-1, h>0, h<H-1].
    """
    P = H * W
    # column-shifted taps (masked at row edges); pltpu.roll(x, s)[p] == x[p - s]
    c_m1 = pltpu.roll(x, 1, 1) * m[0:1, :]        # x[p-1]  (w-1 tap), valid if w > 0
    c_p1 = pltpu.roll(x, P - 1, 1) * m[1:2, :]    # x[p+1]  (w+1 tap), valid if w < W-1
    out = None
    for kh in range(3):                           # kh = dh + 1
        s = (k9[:, 3 * kh + 0:3 * kh + 1] * c_m1 +
             k9[:, 3 * kh + 1:3 * kh + 2] * x +
             k9[:, 3 * kh + 2:3 * kh + 3] * c_p1)
        if kh == 0:                               # dh = -1: need s[p - W], valid if h > 0
            s = pltpu.roll(s, W, 1) * m[2:3, :]
        elif kh == 2:                             # dh = +1: need s[p + W], valid if h < H-1
            s = pltpu.roll(s, P - W, 1) * m[3:4, :]
        out = s if out is None else out + s
    return out                                    # (C, P), stride-1 result


# ----------------------------------- Pallas kernels -----------------------------------

def _s1_kernel(H, W, x_ref, w1_ref, w3_ref, pp_ref, m_ref, o_ref):
    """stride==1 block: out = shuffle(cat([x1, branch2(x2)]), 2); (C, P) layout in/out.

    pp: (Cb, 15) packed params = [dwk(9) | s1 b1 s2 b2 s3 b3].
    """
    Cb = w1_ref.shape[0]
    P = H * W
    x = x_ref[0]                                  # (2Cb, P) f32
    pp = pp_ref[...]
    m = m_ref[...]
    x1 = x[:Cb, :]                                # identity half, exact f32 passthrough
    x2 = x[Cb:, :]

    # 1x1 conv + BN + ReLU  (W @ X: lanes = P = 256, fully dense)
    t = _dot_bf16(w1_ref[...], x2)
    t = jnp.maximum(t * pp[:, 9:10] + pp[:, 10:11], 0.0)
    # depthwise 3x3 (stride 1, pad 1) + BN, roll-based
    y = _dw3x3(t, pp[:, :9], m, H, W)
    y = y * pp[:, 11:12] + pp[:, 12:13]
    # 1x1 conv + BN + ReLU
    z = _dot_bf16(w3_ref[...], y)
    z = jnp.maximum(z * pp[:, 13:14] + pp[:, 14:15], 0.0)   # (Cb, P)

    # fused concat + channel_shuffle(groups=2): out channel 2i = x1[i], 2i+1 = branch2[i]
    inter = jnp.concatenate([x1[:, None, :], z[:, None, :]], axis=1)   # (Cb, 2, P)
    o_ref[0] = inter.reshape(2 * Cb, P)


def _s2_kernel(H, W, x_ref, pa_ref, pb_ref, pf_ref, w1_ref, wf1_ref, wf2_ref,
               sel_ref, m_ref, o_ref):
    """stride>1 block, both branches fused; output channels already shuffled (groups=2).

    pa: (Cin, 11) = [dwk1(9) | s11 b11]    (branch1 dw + BN)
    pb: (Cb, 13)  = [dwk2(9) | s21 b21 s22 b22]  (branch2 1x1-BN + dw-BN)
    pf: (2Cb, 2)  = [sf | bf] interleaved final BN (even<-branch1, odd<-branch2)
    sel: (P0, Po) bf16 one-hot spatial subsample columns.
    """
    x = x_ref[0]                                  # (Cin, P0) f32
    pa = pa_ref[...]
    pb = pb_ref[...]
    pf = pf_ref[...]
    m = m_ref[...]

    # branch1: depthwise 3x3 + BN (computed at stride 1; subsampled below)
    y1 = _dw3x3(x, pa[:, :9], m, H, W)
    y1 = y1 * pa[:, 9:10] + pa[:, 10:11]          # (Cin, P0)

    # branch2: 1x1 + BN + ReLU, depthwise 3x3 + BN
    t = _dot_bf16(w1_ref[...], x)
    t = jnp.maximum(t * pb[:, 9:10] + pb[:, 10:11], 0.0)
    y2 = _dw3x3(t, pb[:, :9], m, H, W)
    y2 = y2 * pb[:, 11:12] + pb[:, 12:13]         # (Cb, P0)

    # Exact stride-s spatial subsample of each branch via one-hot selection matmuls (the MXU has
    # plenty of slack at these sizes; the selection is exact on the bf16-rounded activations,
    # matching the reference's bf16 cast before its final 1x1).  No lane-axis concat.
    y1s = _dot_bf16(y1, sel_ref[...])             # (Cin, Po)
    y2s = _dot_bf16(y2, sel_ref[...])             # (Cb, Po)

    # Fused final 1x1 for both branches, accumulated in f32; wf1/wf2 rows are interleaved
    # (even <- branch1, odd <- branch2, zeros elsewhere) so this IS channel_shuffle(groups=2).
    z = _dot_bf16(wf1_ref[...], y1s) + _dot_bf16(wf2_ref[...], y2s)    # (2Cb, Po)
    z = jnp.maximum(z * pf[:, 0:1] + pf[:, 1:2], 0.0)
    o_ref[0] = z                                  # (2Cb, Po), NCHW-flat


# ----------------------------------- pallas_call glue -----------------------------------

def _const_spec(a):
    nd = a.ndim
    return pl.BlockSpec(a.shape, lambda *_: (0,) * nd)


def _s1_call(x_flat, p, H, W):
    N, C2, P = x_flat.shape
    flat_in = (x_flat, p["w1"], p["w3"], p["pp"], p["masks"])
    in_specs = [pl.BlockSpec((1, C2, P), lambda n: (n, 0, 0))] + \
               [_const_spec(a) for a in flat_in[1:]]
    return pl.pallas_call(
        functools.partial(_s1_kernel, H, W),
        out_shape=jax.ShapeDtypeStruct((N, C2, P), jnp.float32),
        grid=(N,),
        in_specs=in_specs,
        out_specs=pl.BlockSpec((1, C2, P), lambda n: (n, 0, 0)),
        compiler_params=pltpu.CompilerParams(dimension_semantics=("parallel",)),
    )(*flat_in)


def _s2_call(x_flat, p, stride, H, W):
    N, Cin, P0 = x_flat.shape
    Cb = p["w1"].shape[0]
    Po = (H // stride) * (W // stride)
    flat_in = (x_flat, p["pa"], p["pb"], p["pf"], p["w1"], p["wf1"], p["wf2"],
               p["sel"], p["masks"])
    in_specs = [pl.BlockSpec((1, Cin, P0), lambda n: (n, 0, 0))] + \
               [_const_spec(a) for a in flat_in[1:]]
    return pl.pallas_call(
        functools.partial(_s2_kernel, H, W),
        out_shape=jax.ShapeDtypeStruct((N, 2 * Cb, Po), jnp.float32),
        grid=(N,),
        in_specs=in_specs,
        out_specs=pl.BlockSpec((1, 2 * Cb, Po), lambda n: (n, 0, 0)),
        compiler_params=pltpu.CompilerParams(dimension_semantics=("parallel",)),
    )(*flat_in)


# ------------------------------- parameter preparation -------------------------------

def _make_masks(H, W):
    p = np.arange(H * W)
    h, w = p // W, p % W
    m = np.stack([w > 0, w < W - 1, h > 0, h < H - 1]).astype(np.float32)
    return jnp.asarray(m)                          # (4, H*W)


def _dwk9(dwk):
    """(3, 3, C) -> (C, 9), column index = kh*3 + kw."""
    C = dwk.shape[-1]
    return jnp.transpose(dwk.reshape(9, C))


def _prep_s1(p2, H, W):
    Cb = p2["w1"].shape[0]
    pp = jnp.concatenate(
        [_dwk9(p2["dwk"]),
         p2["s1"].reshape(Cb, 1), p2["b1"].reshape(Cb, 1),
         p2["s2"].reshape(Cb, 1), p2["b2"].reshape(Cb, 1),
         p2["s3"].reshape(Cb, 1), p2["b3"].reshape(Cb, 1)], axis=1)   # (Cb, 15)
    return {"w1": p2["w1"].astype(jnp.bfloat16),   # (Cb, Cb), used as W @ X -> no transpose
            "w3": p2["w3"].astype(jnp.bfloat16),
            "pp": pp, "masks": _make_masks(H, W)}


def _prep_s2(params, stride, H, W):
    p1, p2 = params["branch1"], params["branch2"]
    Cb, Cin = p1["w2"].shape
    Ho, Wo = H // stride, W // stride
    pa = jnp.concatenate(
        [_dwk9(p1["dwk"]), p1["s1"].reshape(Cin, 1), p1["b1"].reshape(Cin, 1)], axis=1)
    pb = jnp.concatenate(
        [_dwk9(p2["dwk"]),
         p2["s1"].reshape(Cb, 1), p2["b1"].reshape(Cb, 1),
         p2["s2"].reshape(Cb, 1), p2["b2"].reshape(Cb, 1)], axis=1)
    # Interleaved final 1x1: even output rows <- branch1.w2, odd <- branch2.w3
    # (this IS channel_shuffle(cat([b1, b2]), groups=2)).
    wf1 = jnp.zeros((2 * Cb, Cin), jnp.float32).at[0::2, :].set(p1["w2"])
    wf2 = jnp.zeros((2 * Cb, Cb), jnp.float32).at[1::2, :].set(p2["w3"])
    sf = jnp.stack([p1["s2"].reshape(Cb), p2["s3"].reshape(Cb)], axis=-1).reshape(2 * Cb, 1)
    bf_ = jnp.stack([p1["b2"].reshape(Cb), p2["b3"].reshape(Cb)], axis=-1).reshape(2 * Cb, 1)
    pf = jnp.concatenate([sf, bf_], axis=1)        # (2Cb, 2)
    # One-hot subsample columns: output q = ho*Wo+wo selects flat input (ho*s)*W + wo*s.
    rows = (np.arange(Ho)[:, None] * stride * W + np.arange(Wo)[None, :] * stride).reshape(-1)
    selT = np.zeros((H * W, Ho * Wo), np.float32)
    selT[rows, np.arange(Ho * Wo)] = 1.0
    return {"pa": pa, "pb": pb, "pf": pf,
            "w1": p2["w1"].astype(jnp.bfloat16),   # (Cb, Cin)
            "wf1": wf1.astype(jnp.bfloat16), "wf2": wf2.astype(jnp.bfloat16),
            "sel": jnp.asarray(selT, jnp.bfloat16),
            "masks": _make_masks(H, W)}


# ----------------------------------- forward wrapper -----------------------------------

@functools.partial(jax.jit, static_argnums=(2,))
def inverted_residual_forward(x_nchw, params, stride):
    """Matches InvertedResidual.forward (eval-mode BN folded). x_nchw: (N, Cin, H, W) f32."""
    N, Cin, H, W = x_nchw.shape
    x_flat = x_nchw.reshape(N, Cin, H * W)          # metadata-only reshape
    if stride == 1:
        out = _s1_call(x_flat, _prep_s1(params["branch2"], H, W), H, W)
        return out.reshape(N, Cin, H, W)
    # TODO(synk): stride>1 with H or W not divisible by stride is not supported by this kernel.
    assert H % stride == 0 and W % stride == 0
    out = _s2_call(x_flat, _prep_s2(params, stride, H, W), stride, H, W)
    return out.reshape(N, out.shape[1], H // stride, W // stride)


# ------------------------------ deterministic parameters ------------------------------

def _fold_bn(key, c):
    kg, kb, km, kv = jax.random.split(key, 4)
    gamma = jax.random.uniform(kg, (c,), jnp.float32, 0.5, 1.5)
    beta = jax.random.normal(kb, (c,), jnp.float32) * 0.1
    mean = jax.random.normal(km, (c,), jnp.float32) * 0.1
    var = jax.random.uniform(kv, (c,), jnp.float32, 0.5, 1.5)
    scale = gamma / jnp.sqrt(var + 1e-5)
    bias = beta - mean * scale
    return scale.reshape(1, c), bias.reshape(1, c)


def init_params(key, inp, oup, stride):
    Cb = oup // 2
    assert stride != 1 or inp == Cb * 2
    ks = jax.random.split(key, 10)
    in2 = inp if stride > 1 else Cb
    branch2 = {
        "w1": jax.random.normal(ks[0], (Cb, in2), jnp.float32) * 0.2,    # Conv1x1 (out, in)
        "dwk": jax.random.normal(ks[1], (3, 3, Cb), jnp.float32) * 0.2,  # depthwise (kh, kw, C)
        "w3": jax.random.normal(ks[2], (Cb, Cb), jnp.float32) * 0.2,
    }
    branch2["s1"], branch2["b1"] = _fold_bn(ks[3], Cb)
    branch2["s2"], branch2["b2"] = _fold_bn(ks[4], Cb)
    branch2["s3"], branch2["b3"] = _fold_bn(ks[5], Cb)
    params = {"branch2": branch2}
    if stride > 1:
        branch1 = {
            "dwk": jax.random.normal(ks[6], (3, 3, inp), jnp.float32) * 0.2,
            "w2": jax.random.normal(ks[7], (Cb, inp), jnp.float32) * 0.2,
        }
        branch1["s1"], branch1["b1"] = _fold_bn(ks[8], inp)
        branch1["s2"], branch1["b2"] = _fold_bn(ks[9], Cb)
        params["branch1"] = branch1
    return params


# ----------------------------- pure-JAX reference (check) -----------------------------

def channel_shuffle_nchw(x, groups):
    N, C, H, W = x.shape
    x = x.reshape(N, groups, C // groups, H, W)
    x = jnp.transpose(x, (0, 2, 1, 3, 4))
    return x.reshape(N, C, H, W)


def _ref_conv1x1(x_nhwc, w):
    wt = jnp.transpose(w).reshape(1, 1, w.shape[1], w.shape[0]).astype(jnp.bfloat16)
    return lax.conv_general_dilated(
        x_nhwc.astype(jnp.bfloat16), wt, window_strides=(1, 1), padding="VALID",
        dimension_numbers=("NHWC", "HWIO", "NHWC"),
        preferred_element_type=jnp.float32)


def _ref_dw(x_nhwc, k, stride):
    C = x_nhwc.shape[-1]
    return lax.conv_general_dilated(
        x_nhwc, k.reshape(3, 3, 1, C),
        window_strides=(stride, stride), padding=((1, 1), (1, 1)),
        dimension_numbers=("NHWC", "HWIO", "NHWC"),
        feature_group_count=C, precision=lax.Precision.HIGHEST)


def _ref_branch2(x, p, stride):
    y = jnp.maximum(_ref_conv1x1(x, p["w1"]) * p["s1"][0] + p["b1"][0], 0.0)
    y = _ref_dw(y, p["dwk"], stride) * p["s2"][0] + p["b2"][0]
    y = jnp.maximum(_ref_conv1x1(y, p["w3"]) * p["s3"][0] + p["b3"][0], 0.0)
    return y


def _ref_branch1(x, p, stride):
    y = _ref_dw(x, p["dwk"], stride) * p["s1"][0] + p["b1"][0]
    y = jnp.maximum(_ref_conv1x1(y, p["w2"]) * p["s2"][0] + p["b2"][0], 0.0)
    return y


def ref_forward(x_nchw, params, stride):
    x = jnp.transpose(x_nchw, (0, 2, 3, 1))
    if stride == 1:
        Cb = x.shape[-1] // 2
        out = jnp.concatenate(
            [x[..., :Cb], _ref_branch2(x[..., Cb:], params["branch2"], 1)], axis=-1)
    else:
        out = jnp.concatenate(
            [_ref_branch1(x, params["branch1"], stride),
             _ref_branch2(x, params["branch2"], stride)], axis=-1)
    out = jnp.transpose(out, (0, 3, 1, 2))
    return channel_shuffle_nchw(out, 2)


# ----------------------------------------- main -----------------------------------------

if __name__ == "__main__":
    key = jax.random.PRNGKey(0)
    kx1, kx2, kp1, kp2 = jax.random.split(key, 4)

    N, H, W = 2, 16, 16

    # Case 1: stride = 1 (inp == oup, identity half)
    inp1 = oup1 = 32
    x1 = jax.random.normal(kx1, (N, inp1, H, W), jnp.float32)
    params1 = init_params(kp1, inp1, oup1, 1)
    out1 = jax.block_until_ready(inverted_residual_forward(x1, params1, 1))
    ref1 = jax.block_until_ready(ref_forward(x1, params1, 1))
    assert out1.shape == (N, oup1, H, W)
    np.testing.assert_allclose(np.asarray(out1), np.asarray(ref1), rtol=5e-3, atol=5e-3)

    # Case 2: stride = 2 (downsampling block, both branches fused into one kernel)
    inp2, oup2 = 32, 64
    x2 = jax.random.normal(kx2, (N, inp2, H, W), jnp.float32)
    params2 = init_params(kp2, inp2, oup2, 2)
    out2 = jax.block_until_ready(inverted_residual_forward(x2, params2, 2))
    ref2 = jax.block_until_ready(ref_forward(x2, params2, 2))
    assert out2.shape == (N, oup2, H // 2, W // 2)
    np.testing.assert_allclose(np.asarray(out2), np.asarray(ref2), rtol=5e-3, atol=5e-3)

    print("KERNEL_OK")
</pallas_src>

<mosaic_0001>
module attributes {stable_mosaic.version = 11 : i64} {
  func.func @_s1_kernel(%arg0: i32, %arg1: memref<1x32x256xf32, #tpu.memory_space<vmem>>, %arg2: memref<16x16xbf16, #tpu.memory_space<vmem>>, %arg3: memref<16x16xbf16, #tpu.memory_space<vmem>>, %arg4: memref<16x15xf32, #tpu.memory_space<vmem>>, %arg5: memref<4x256xf32, #tpu.memory_space<vmem>>, %arg6: memref<1x32x256xf32, #tpu.memory_space<vmem>>) attributes {dimension_semantics = [#tpu.dimension_semantics<parallel>], iteration_bounds = array<i64: 2>, scalar_prefetch = 0 : i64, scratch_operands = 0 : i64, tpu.core_type = #tpu.core_type<tc>, window_params = [{transform_indices = @transform_0, window_bounds = array<i64: 1, 32, 256>}, {pipeline_mode = #tpu.pipeline_mode<synchronous>, transform_indices = @transform_1, window_bounds = array<i64: 16, 16>}, {pipeline_mode = #tpu.pipeline_mode<synchronous>, transform_indices = @transform_2, window_bounds = array<i64: 16, 16>}, {pipeline_mode = #tpu.pipeline_mode<synchronous>, transform_indices = @transform_3, window_bounds = array<i64: 16, 15>}, {pipeline_mode = #tpu.pipeline_mode<synchronous>, transform_indices = @transform_4, window_bounds = array<i64: 4, 256>}, {transform_indices = @transform_5, window_bounds = array<i64: 1, 32, 256>}]} {
    %c0 = arith.constant 0 : index
    %c0_0 = arith.constant 0 : index
    %c0_1 = arith.constant 0 : index
    %0 = vector.load %arg1[%c0, %c0_0, %c0_1] : memref<1x32x256xf32, #tpu.memory_space<vmem>>, vector<1x32x256xf32>
    %1 = vector.shape_cast %0 : vector<1x32x256xf32> to vector<32x256xf32>
    %c0_2 = arith.constant 0 : index
    %c0_3 = arith.constant 0 : index
    %2 = vector.load %arg4[%c0_2, %c0_3] : memref<16x15xf32, #tpu.memory_space<vmem>>, vector<16x15xf32>
    %c0_4 = arith.constant 0 : index
    %c0_5 = arith.constant 0 : index
    %3 = vector.load %arg5[%c0_4, %c0_5] : memref<4x256xf32, #tpu.memory_space<vmem>>, vector<4x256xf32>
    %4 = vector.extract_strided_slice %1 {offsets = [0, 0], sizes = [16, 256], strides = [1, 1]} : vector<32x256xf32> to vector<16x256xf32>
    %5 = vector.extract_strided_slice %1 {offsets = [16, 0], sizes = [16, 256], strides = [1, 1]} : vector<32x256xf32> to vector<16x256xf32>
    %c0_6 = arith.constant 0 : index
    %c0_7 = arith.constant 0 : index
    %6 = vector.load %arg2[%c0_6, %c0_7] : memref<16x16xbf16, #tpu.memory_space<vmem>>, vector<16x16xbf16>
    %7 = arith.truncf %5 : vector<16x256xf32> to vector<16x256xbf16>
    %cst = arith.constant dense<0.000000e+00> : vector<16x256xf32>
    %8 = tpu.matmul %6, %7, %cst {dimension_numbers = #tpu.dot_dimension_numbers<[1], [0], [0], [1], [0, 0, 1, 1], [], []>} : vector<16x16xbf16>, vector<16x256xbf16>, vector<16x256xf32> -> vector<16x256xf32>
    %9 = vector.extract_strided_slice %2 {offsets = [0, 9], sizes = [16, 1], strides = [1, 1]} : vector<16x15xf32> to vector<16x1xf32>
    %10 = vector.broadcast %9 : vector<16x1xf32> to vector<16x256xf32>
    %11 = arith.mulf %8, %10 : vector<16x256xf32>
    %12 = vector.extract_strided_slice %2 {offsets = [0, 10], sizes = [16, 1], strides = [1, 1]} : vector<16x15xf32> to vector<16x1xf32>
    %13 = vector.broadcast %12 : vector<16x1xf32> to vector<16x256xf32>
    %14 = arith.addf %11, %13 : vector<16x256xf32>
    %cst_8 = arith.constant 0.000000e+00 : f32
    %15 = vector.broadcast %cst_8 : f32 to vector<16x256xf32>
    %16 = arith.maximumf %14, %15 : vector<16x256xf32>
    %17 = vector.extract_strided_slice %2 {offsets = [0, 0], sizes = [16, 9], strides = [1, 1]} : vector<16x15xf32> to vector<16x9xf32>
    %c1_i32 = arith.constant 1 : i32
    %18 = tpu.dynamic_rotate %16 by %c1_i32 dim 1 : vector<16x256xf32>, i32 -> vector<16x256xf32>
    %19 = vector.extract_strided_slice %3 {offsets = [0, 0], sizes = [1, 256], strides = [1, 1]} : vector<4x256xf32> to vector<1x256xf32>
    %20 = vector.broadcast %19 : vector<1x256xf32> to vector<16x256xf32>
    %21 = arith.mulf %18, %20 : vector<16x256xf32>
    %c255_i32 = arith.constant 255 : i32
    %22 = tpu.dynamic_rotate %16 by %c255_i32 dim 1 : vector<16x256xf32>, i32 -> vector<16x256xf32>
    %23 = vector.extract_strided_slice %3 {offsets = [1, 0], sizes = [1, 256], strides = [1, 1]} : vector<4x256xf32> to vector<1x256xf32>
    %24 = vector.broadcast %23 : vector<1x256xf32> to vector<16x256xf32>
    %25 = arith.mulf %22, %24 : vector<16x256xf32>
    %26 = vector.extract_strided_slice %17 {offsets = [0, 0], sizes = [16, 1], strides = [1, 1]} : vector<16x9xf32> to vector<16x1xf32>
    %27 = vector.broadcast %26 : vector<16x1xf32> to vector<16x256xf32>
    %28 = arith.mulf %27, %21 : vector<16x256xf32>
    %29 = vector.extract_strided_slice %17 {offsets = [0, 1], sizes = [16, 1], strides = [1, 1]} : vector<16x9xf32> to vector<16x1xf32>
    %30 = vector.broadcast %29 : vector<16x1xf32> to vector<16x256xf32>
    %31 = arith.mulf %30, %16 : vector<16x256xf32>
    %32 = arith.addf %28, %31 : vector<16x256xf32>
    %33 = vector.extract_strided_slice %17 {offsets = [0, 2], sizes = [16, 1], strides = [1, 1]} : vector<16x9xf32> to vector<16x1xf32>
    %34 = vector.broadcast %33 : vector<16x1xf32> to vector<16x256xf32>
    %35 = arith.mulf %34, %25 : vector<16x256xf32>
    %36 = arith.addf %32, %35 : vector<16x256xf32>
    %c16_i32 = arith.constant 16 : i32
    %37 = tpu.dynamic_rotate %36 by %c16_i32 dim 1 : vector<16x256xf32>, i32 -> vector<16x256xf32>
    %38 = vector.extract_strided_slice %3 {offsets = [2, 0], sizes = [1, 256], strides = [1, 1]} : vector<4x256xf32> to vector<1x256xf32>
    %39 = vector.broadcast %38 : vector<1x256xf32> to vector<16x256xf32>
    %40 = arith.mulf %37, %39 : vector<16x256xf32>
    %41 = vector.extract_strided_slice %17 {offsets = [0, 3], sizes = [16, 1], strides = [1, 1]} : vector<16x9xf32> to vector<16x1xf32>
    %42 = vector.broadcast %41 : vector<16x1xf32> to vector<16x256xf32>
    %43 = arith.mulf %42, %21 : vector<16x256xf32>
    %44 = vector.extract_strided_slice %17 {offsets = [0, 4], sizes = [16, 1], strides = [1, 1]} : vector<16x9xf32> to vector<16x1xf32>
    %45 = vector.broadcast %44 : vector<16x1xf32> to vector<16x256xf32>
    %46 = arith.mulf %45, %16 : vector<16x256xf32>
    %47 = arith.addf %43, %46 : vector<16x256xf32>
    %48 = vector.extract_strided_slice %17 {offsets = [0, 5], sizes = [16, 1], strides = [1, 1]} : vector<16x9xf32> to vector<16x1xf32>
    %49 = vector.broadcast %48 : vector<16x1xf32> to vector<16x256xf32>
    %50 = arith.mulf %49, %25 : vector<16x256xf32>
    %51 = arith.addf %47, %50 : vector<16x256xf32>
    %52 = arith.addf %40, %51 : vector<16x256xf32>
    %53 = vector.extract_strided_slice %17 {offsets = [0, 6], sizes = [16, 1], strides = [1, 1]} : vector<16x9xf32> to vector<16x1xf32>
    %54 = vector.broadcast %53 : vector<16x1xf32> to vector<16x256xf32>
    %55 = arith.mulf %54, %21 : vector<16x256xf32>
    %56 = vector.extract_strided_slice %17 {offsets = [0, 7], sizes = [16, 1], strides = [1, 1]} : vector<16x9xf32> to vector<16x1xf32>
    %57 = vector.broadcast %56 : vector<16x1xf32> to vector<16x256xf32>
    %58 = arith.mulf %57, %16 : vector<16x256xf32>
    %59 = arith.addf %55, %58 : vector<16x256xf32>
    %60 = vector.extract_strided_slice %17 {offsets = [0, 8], sizes = [16, 1], strides = [1, 1]} : vector<16x9xf32> to vector<16x1xf32>
    %61 = vector.broadcast %60 : vector<16x1xf32> to vector<16x256xf32>
    %62 = arith.mulf %61, %25 : vector<16x256xf32>
    %63 = arith.addf %59, %62 : vector<16x256xf32>
    %c240_i32 = arith.constant 240 : i32
    %64 = tpu.dynamic_rotate %63 by %c240_i32 dim 1 : vector<16x256xf32>, i32 -> vector<16x256xf32>
    %65 = vector.extract_strided_slice %3 {offsets = [3, 0], sizes = [1, 256], strides = [1, 1]} : vector<4x256xf32> to vector<1x256xf32>
    %66 = vector.broadcast %65 : vector<1x256xf32> to vector<16x256xf32>
    %67 = arith.mulf %64, %66 : vector<16x256xf32>
    %68 = arith.addf %52, %67 : vector<16x256xf32>
    %69 = vector.extract_strided_slice %2 {offsets = [0, 11], sizes = [16, 1], strides = [1, 1]} : vector<16x15xf32> to vector<16x1xf32>
    %70 = vector.broadcast %69 : vector<16x1xf32> to vector<16x256xf32>
    %71 = arith.mulf %68, %70 : vector<16x256xf32>
    %72 = vector.extract_strided_slice %2 {offsets = [0, 12], sizes = [16, 1], strides = [1, 1]} : vector<16x15xf32> to vector<16x1xf32>
    %73 = vector.broadcast %72 : vector<16x1xf32> to vector<16x256xf32>
    %74 = arith.addf %71, %73 : vector<16x256xf32>
    %c0_9 = arith.constant 0 : index
    %c0_10 = arith.constant 0 : index
    %75 = vector.load %arg3[%c0_9, %c0_10] : memref<16x16xbf16, #tpu.memory_space<vmem>>, vector<16x16xbf16>
    %76 = arith.truncf %74 : vector<16x256xf32> to vector<16x256xbf16>
    %cst_11 = arith.constant dense<0.000000e+00> : vector<16x256xf32>
    %77 = tpu.matmul %75, %76, %cst_11 {dimension_numbers = #tpu.dot_dimension_numbers<[1], [0], [0], [1], [0, 0, 1, 1], [], []>} : vector<16x16xbf16>, vector<16x256xbf16>, vector<16x256xf32> -> vector<16x256xf32>
    %78 = vector.extract_strided_slice %2 {offsets = [0, 13], sizes = [16, 1], strides = [1, 1]} : vector<16x15xf32> to vector<16x1xf32>
    %79 = vector.broadcast %78 : vector<16x1xf32> to vector<16x256xf32>
    %80 = arith.mulf %77, %79 : vector<16x256xf32>
    %81 = vector.extract_strided_slice %2 {offsets = [0, 14], sizes = [16, 1], strides = [1, 1]} : vector<16x15xf32> to vector<16x1xf32>
    %82 = vector.broadcast %81 : vector<16x1xf32> to vector<16x256xf32>
    %83 = arith.addf %80, %82 : vector<16x256xf32>
    %cst_12 = arith.constant 0.000000e+00 : f32
    %84 = vector.broadcast %cst_12 : f32 to vector<16x256xf32>
    %85 = arith.maximumf %83, %84 : vector<16x256xf32>
    %86 = vector.shape_cast %4 : vector<16x256xf32> to vector<16x1x256xf32>
    %87 = vector.shape_cast %85 : vector<16x256xf32> to vector<16x1x256xf32>
    %88 = tpu.concatenate %86, %87 in 1 : vector<16x1x256xf32>, vector<16x1x256xf32> -> vector<16x2x256xf32>
    %89 = vector.shape_cast %88 : vector<16x2x256xf32> to vector<32x256xf32>
    %c0_13 = arith.constant 0 : index
    %c0_14 = arith.constant 0 : index
    %c0_15 = arith.constant 0 : index
    %90 = vector.load %arg6[%c0_13, %c0_14, %c0_15] : memref<1x32x256xf32, #tpu.memory_space<vmem>>, vector<1x32x256xf32>
    %91 = vector.shape_cast %90 : vector<1x32x256xf32> to vector<32x256xf32>
    %92 = vector.shape_cast %89 : vector<32x256xf32> to vector<1x32x256xf32>
    tpu.vector_store %arg6[%c0_13, %c0_14, %c0_15], %92 {strides = array<i32>} : memref<1x32x256xf32, #tpu.memory_space<vmem>>, vector<1x32x256xf32>,
    return
  }
  func.func @transform_0(%arg0: i32) -> (i32, i32, i32) {
    %c0_i32 = arith.constant 0 : i32
    %c0_i32_0 = arith.constant 0 : i32
    %c0_i32_1 = arith.constant 0 : i32
    return %arg0, %c0_i32, %c0_i32_0 : i32, i32, i32
  }
  func.func @transform_1(%arg0: i32) -> (i32, i32) {
    %c0_i32 = arith.constant 0 : i32
    %c0_i32_0 = arith.constant 0 : i32
    %c0_i32_1 = arith.constant 0 : i32
    return %c0_i32, %c0_i32_0 : i32, i32
  }
  func.func @transform_2(%arg0: i32) -> (i32, i32) {
    %c0_i32 = arith.constant 0 : i32
    %c0_i32_0 = arith.constant 0 : i32
    %c0_i32_1 = arith.constant 0 : i32
    return %c0_i32, %c0_i32_0 : i32, i32
  }
  func.func @transform_3(%arg0: i32) -> (i32, i32) {
    %c0_i32 = arith.constant 0 : i32
    %c0_i32_0 = arith.constant 0 : i32
    %c0_i32_1 = arith.constant 0 : i32
    return %c0_i32, %c0_i32_0 : i32, i32
  }
  func.func @transform_4(%arg0: i32) -> (i32, i32) {
    %c0_i32 = arith.constant 0 : i32
    %c0_i32_0 = arith.constant 0 : i32
    %c0_i32_1 = arith.constant 0 : i32
    return %c0_i32, %c0_i32_0 : i32, i32
  }
  func.func @transform_5(%arg0: i32) -> (i32, i32, i32) {
    %c0_i32 = arith.constant 0 : i32
    %c0_i32_0 = arith.constant 0 : i32
    %c0_i32_1 = arith.constant 0 : i32
    return %arg0, %c0_i32, %c0_i32_0 : i32, i32, i32
  }
}

</mosaic_0001>

<bundles_post_ra>
// kernel: inverted_residual_forward.1
= control target key start
LH: loop header
LB: loop body
LE: loop exit
PB: predicated region body
PF: predicated region fallthrough
CT: control target
= control target key end

     0   :  { %s1715_s18 = smov 0   ;;  %s2285_s0 = inlined_call_operand.vmem [shape: f32[2,32,256], index: 0, kind: input, shape index: {}]   ;;  %s2286_s1 = inlined_call_operand.vmem [shape: bf16[16,16], index: 1, kind: input, shape index: {}]   ;;  %s2287_s2 = inlined_call_operand.vmem [shape: bf16[16,16], index: 2, kind: input, shape index: {}]   ;;  %s2288_s3 = inlined_call_operand.vmem [shape: f32[16,15], index: 3, kind: input, shape index: {}]   ;;  %s2289_s4 = inlined_call_operand.vmem [shape: f32[4,256], index: 4, kind: input, shape index: {}]   ;;  %s2290_s5 = inlined_call_operand.vmem [shape: f32[2,32,256], index: 5, kind: output, shape index: {}]  }
   0x1 LB: > { %s1577_s19 = sadd.s32 4294967295, %s1662_s18   ;;  %p1581_p0 = scmp.ge.s32.totalorder %s1662_s18, 1  ;;  %s1662_s18 = sphi %s1715_s18, %s15_s18  }
   0x2   : > { %p187_p1 = scmp.lt.s32.totalorder %s1662_s18, 3 }
   0x4   : > { %p188_p2 = pnand %p1581_p0, %p187_p1 }
   0x5   : > { %p215_p3 = scmp.lt.s32.totalorder (!%p188_p2), %s1577_s19, 1  ;;  %s1672_s30 = smov (!%p188_p2), 127  }
   0x6   : > { %191 = sbr.rel (%p188_p2) target bundleno = 761 (0x2f9), region = 40  ;;  %s1673_s6 = smov (!%p188_p2), 1  }
   0x7   : > { %s1679_s9 = smov (!%p188_p2), 16   ;;  %s1680_s10 = smov (!%p188_p2), 112  }
   0xb   : > { %v1664_v0 = vmov 0   ;;  %v1726_v1 = vld [vmem:[%s2288_s3] sm:$0xff]  ;;  %s2302_s19 = smov (!%p215_p3, %s1577_s19), 1  ;;  %v1665_v2 = vmov 10   ;;  %v1666_v3 = vmov 9   ;;  %v1735_v4 = vld [vmem:[%s2288_s3 + $0x8] sm:$0xff]  ;;  %v331_v48 = vlaneseq }
   0xc   : > { %282 = vmatprep.mubr.bf16.mxu0 %v1664_v0  ;;  %674 = vmatprep.mubr.bf16.mxu1 %v1664_v0  ;;  %s1592_s22 = sshll.u32 %s2302_s19, 6  ;;  %v1648_v11 = vld [vmem:[%s2286_s1] sm:$0xff]   ;;  %vm246_vm0 = vcmask 130048   ;;  %v1667_v12 = vmov 1   ;;  %v1668_v13 = vmov 2   ;;  %v1669_v14 = vmov 6  }
   0xd   : > { %1624 = vset.pattern.permute.xlu1 %v1665_v2  ;;  %1623 = vset.pattern.permute.xlu0 %v1666_v3  ;;  %s1743_s27 = scalar_lea.vmem %s2285_s0, %s1592_s22  ;;  %v1670_v15 = vmov 7   ;;  %v1671_v16 = vmov 8   ;;  %v1674_v37 = vmov 3   ;;  %v1675_v38 = vmov 5   ;;  %v1810_v54 = vld [vmem:[%s2289_s4] sm:$0xff]  ;;  %s2180_s15 = scalar_lea.vmem %s2290_s5, %s1592_s22 }
   0xe   : > { %308 = vperm.xlu1 %1624, %v1726_v1   ;;  %295 = vperm.xlu0 %1623, %v1726_v1   ;;  %v231_v5 = vld [vmem:[%s1743_s27 + $0x28] sm:$0xff]  ;;  %v233_v6 = vld [vmem:[%s1743_s27 + $0x38] sm:$0xff]  ;;  %v230_v7 = vld [vmem:[%s1743_s27 + $0x20] sm:$0xff]  ;;  %v1676_v39 = vmov 11   ;;  %v1677_v40 = vmov 4   ;;  %v1678_v41 = vmov 12  }
   0xf   : > { %v240_v8 = vpack.c.bf16 %v233_v6, %v231_v5  ;;  %v232_v9 = vld [vmem:[%s1743_s27 + $0x30] sm:$0xff]  ;;  %v1800_v51 = vshrl.u32 %v331_v48, 7  ;;  %v1815_v57 = vand.u32 127, %v331_v48  ;;  %vm1241_vm5 = vcmask 1040384  }
  0x10   : > { %v239_v10 = vpack.c.bf16 %v232_v9, %v230_v7 }
  0x11   : > { %264 = vmatprep.subr.bf16.mxu0 %v240_v8  ;;  %v1805_v53 = vsub.s32 0, %v1800_v51  ;;  %v345_v56 = vsub.s32 4, %v1800_v51  ;;  %v1820_v59 = vsub.s32 1, %v1800_v51  ;;  %v380_v60 = vsub.s32 5, %v1800_v51 }
  0x12   : > { %312 = vperm.xlu1 %1624, %v1735_v4   ;;  %300 = vperm.xlu0 %1623, %v1735_v4   ;;  %vm333_vm1 = vcmp.lt.s32.totalorder %v1815_v57, 1  ;;  %vm369_vm2 = vcmp.lt.s32.totalorder %v1815_v57, 127  ;;  %vm448_vm3 = vcmp.lt.s32.totalorder %v1815_v57, 16  ;;  %vm575_vm4 = vcmp.lt.s32.totalorder %v1815_v57, 112 }
  0x13   : > { %265 = vmatpush1.bf16.msra.mxu0 %v239_v10  ;;  %v342_v58 = vrot.slane %v1810_v54, %v1805_v53  ;;  %v346_v63 = vrot.slane %v1810_v54, %v345_v56  ;;  %v377_v2 = vrot.slane %v1810_v54, %v1820_v59  ;;  %v381_v3 = vrot.slane %v1810_v54, %v380_v60 }
  0x15   : > { %v356_v5 = vrot.slane %v346_v63, %v1805_v53 }
  0x16   : > { %1626 = vset.pattern.permute.xlu1 %v1664_v0  ;;  %1625 = vset.pattern.permute.xlu0 %v1664_v0  ;;  %v352_v0 = vrot.slane %v342_v58, %v1805_v53 }
  0x17   : > { %401 = vperm.xlu1 %1626, %v1735_v4   ;;  %1587 = vmatmul.mubr.msk.bf16.vlgmr.msra.gmra.mxu0 %vm246_vm0, %v1648_v11  ;;  %v387_v11 = vrot.slane %v377_v2, %v1820_v59 }
  0x18   : > { %397 = vperm.xlu0 %1625, %v1726_v1  }
  0x1b   : > { %1627 = vset.pattern.permute.xlu1 %v1667_v12 }
  0x1c   : > { %409 = vperm.xlu1 %1627, %v1726_v1   ;;  %1628 = vset.pattern.permute.xlu0 %v1667_v12  ;;  %v391_v12 = vrot.slane %v381_v3, %v1820_v59 }
  0x1d   : > { %413 = vperm.xlu0 %1628, %v1735_v4  }
  0x20   : > { %1630 = vset.pattern.permute.xlu1 %v1668_v13 }
  0x21   : > { %429 = vperm.xlu1 %1630, %v1735_v4   ;;  %1629 = vset.pattern.permute.xlu0 %v1668_v13 }
  0x22   : > { %425 = vperm.xlu0 %1629, %v1726_v1  }
  0x25   : > { %1631 = vset.pattern.permute.xlu1 %v1669_v14 }
  0x26   : > { %524 = vperm.xlu1 %1631, %v1726_v1   ;;  %1632 = vset.pattern.permute.xlu0 %v1669_v14 }
  0x27   : > { %528 = vperm.xlu0 %1632, %v1735_v4  }
  0x2a   : > { %1633 = vset.pattern.permute.xlu1 %v1670_v15 }
  0x2b   : > { %536 = vperm.xlu1 %1633, %v1726_v1   ;;  %1634 = vset.pattern.permute.xlu0 %v1671_v16 }
  0x2f   : > { %540 = vperm.xlu1 %1633, %v1735_v4  }
  0x33   : > { %1635 = vset.pattern.permute.xlu1 %v1671_v16 }
  0x89   : > { %v296_v17 = vpop.permute.xlu0 %295  ;;  %v309_v18 = vpop.permute.xlu1 %308 }
  0x8d   : > { %v301_v24 = vpop.permute.xlu0 %300  ;;  %v313_v29 = vpop.permute.xlu1 %312 }
  0x92   : > { %v1790_v42 = vpop.permute.xlu1 %401 }
  0x93   : > { %v398_v45 = vpop.permute.xlu0 %397 }
  0x97   : > { %v410_v43 = vpop.permute.xlu1 %409 }
  0x98   : > { %v1796_v47 = vpop.permute.xlu0 %413 }
  0x9c   : > { %v1792_v44 = vpop.permute.xlu1 %429 }
  0x9d   : > { %v426_v49 = vpop.permute.xlu0 %425 }
  0xa1   : > { %v1794_v46 = vpop.permute.xlu1 %524 }
  0xa2   : > { %v1802_v52 = vpop.permute.xlu0 %528 }
  0xa6   : > { %v1798_v50 = vpop.permute.xlu1 %536 }
  0xaa   : > { %v1812_v55 = vpop.permute.xlu1 %540 }
  0xd7   : > { %v284_v19 = vpop.f32.mrf.mxu0 }
  0xd8   : > { %v303_v20 = vmul.f32 %v296_v17, %v284_v19 }
  0xd9   : > { %v286_v21 = vpop.f32.mrf.mxu0 }
  0xda   : > { %v315_v22 = vadd.f32 %v309_v18, %v303_v20  ;;  %v304_v23 = vmul.f32 %v296_v17, %v286_v21 }
  0xdb   : > { %v288_v25 = vpop.f32.mrf.mxu0 }
  0xdc   : > { %v1765_v26 = vmax.f32 %v315_v22, 0.0  ;;  %v316_v27 = vadd.f32 %v309_v18, %v304_v23  ;;  %v305_v28 = vmul.f32 %v301_v24, %v288_v25 }
  0xdd   : > { %v290_v30 = vpop.f32.mrf.mxu0 }
  0xde   : > { %v317_v31 = vadd.f32 %v313_v29, %v305_v28  ;;  %361 = vrot.lane.b32.xlu0 %v1765_v26, %s1672_s30  ;;  %323 = vrot.lane.b32.xlu1 %v1765_v26, %s1673_s6  ;;  %v1769_v32 = vmax.f32 %v316_v27, 0.0  ;;  %v306_v34 = vmul.f32 %v301_v24, %v290_v30  ;;  %v416_v21 = vmul.f32 %v410_v43, %v1765_v26 }
  0xdf   : > { %v543_v58 = vmul.f32 %v1798_v50, %v1765_v26 }
  0xe0   : > { %v1771_v33 = vmax.f32 %v317_v31, 0.0  ;;  %v318_v35 = vadd.f32 %v313_v29, %v306_v34  ;;  %v417_v31 = vmul.f32 %v410_v43, %v1769_v32 }
  0xe2   : > { %327 = vrot.lane.b32.xlu0 %v1769_v32, %s1673_s6  ;;  %325 = vrot.lane.b32.xlu1 %v1771_v33, %s1673_s6  ;;  %v1777_v36 = vmax.f32 %v318_v35, 0.0 }
  0xe4   : > { %v419_v63 = vmul.f32 %v1796_v47, %v1777_v36 }
  0xe6   : > { %365 = vrot.lane.b32.xlu0 %v1769_v32, %s1672_s30  ;;  %363 = vrot.lane.b32.xlu1 %v1771_v33, %s1672_s30 }
  0xea   : > { %552 = vperm.xlu0 %1634, %v1726_v1   ;;  %329 = vrot.lane.b32.xlu1 %v1777_v36, %s1673_s6 }
  0xee   : > { %1637 = vset.pattern.permute.xlu0 %v1674_v37  ;;  %367 = vrot.lane.b32.xlu1 %v1777_v36, %s1672_s30 }
  0xef   : > { %480 = vperm.xlu0 %1637, %v1735_v4  }
  0xf2   : > { %556 = vperm.xlu1 %1635, %v1735_v4  }
  0xf3   : > { %1639 = vset.pattern.permute.xlu0 %v1675_v38 }
  0xf4   : > { %504 = vperm.xlu0 %1639, %v1726_v1  }
  0xf6   : > { %1636 = vset.pattern.permute.xlu1 %v1674_v37 }
  0xf7   : > { %476 = vperm.xlu1 %1636, %v1726_v1  }
  0xf8   : > { %1642 = vset.pattern.permute.xlu0 %v1676_v39 }
  0xfb   : > { %1638 = vset.pattern.permute.xlu1 %v1677_v40  ;;  %v418_v40 = vmul.f32 %v1796_v47, %v1771_v33 }
  0xfc   : > { %488 = vperm.xlu1 %1638, %v1726_v1  }
 0x100   : > { %492 = vperm.xlu1 %1638, %v1735_v4  }
 0x104   : > { %1640 = vset.pattern.permute.xlu1 %v1675_v38 }
 0x105   : > { %508 = vperm.xlu1 %1640, %v1735_v4  }
 0x109   : > { %1641 = vset.pattern.permute.xlu1 %v1676_v39 }
 0x10a   : > { %607 = vperm.xlu1 %1641, %v1726_v1  }
 0x10e   : > { %1643 = vset.pattern.permute.xlu1 %v1678_v41 }
 0x150   : > { %v362_v61 = vpop.permute.xlu0 %361  ;;  %v324_v62 = vpop.permute.xlu1 %323 }
 0x154   : > { %v328_v6 = vpop.permute.xlu0 %327  ;;  %v326_v7 = vpop.permute.xlu1 %325 }
 0x155   : > { %v334_v8 = vsel %vm333_vm1, %v324_v62, %v328_v6  ;;  %v336_v9 = vsel %vm333_vm1, %v328_v6, %v324_v62 }
 0x156   : > { %v1834_v10 = vmul.f32 %v352_v0, %v336_v9  ;;  %v1839_v13 = vmul.f32 %v356_v5, %v334_v8 }
 0x158   : > { %v404_v14 = vmul.f32 %v398_v45, %v1834_v10  ;;  %v366_v15 = vpop.permute.xlu0 %365  ;;  %v364_v16 = vpop.permute.xlu1 %363  ;;  %v405_v22 = vmul.f32 %v398_v45, %v1839_v13  ;;  %v531_v45 = vmul.f32 %v1794_v46, %v1834_v10 }
 0x159   : > { %v370_v17 = vsel %vm369_vm2, %v362_v61, %v366_v15  ;;  %v372_v18 = vsel %vm369_vm2, %v366_v15, %v362_v61 }
 0x15a   : > { %v1846_v19 = vmul.f32 %v387_v11, %v370_v17  ;;  %v1848_v20 = vmul.f32 %v391_v12, %v372_v18  ;;  %v420_v24 = vadd.f32 %v416_v21, %v404_v14  ;;  %v421_v39 = vadd.f32 %v417_v31, %v405_v22 }
 0x15b   : > { %v547_v3 = vadd.f32 %v543_v58, %v531_v45  ;;  %v545_v14 = vmul.f32 %v1812_v55, %v1771_v33  ;;  %v546_v18 = vmul.f32 %v1812_v55, %v1777_v36 }
 0x15c   : > { %v330_v23 = vpop.permute.xlu1 %329  ;;  %v432_v25 = vmul.f32 %v426_v49, %v1846_v19  ;;  %v433_v34 = vmul.f32 %v426_v49, %v1848_v20 }
 0x15d   : > { %v335_v27 = vsel %vm333_vm1, %v326_v7, %v330_v23  ;;  %v337_v28 = vsel %vm333_vm1, %v330_v23, %v326_v7  ;;  %v544_v7 = vmul.f32 %v1798_v50, %v1769_v32 }
 0x15e   : > { %v1857_v29 = vmul.f32 %v352_v0, %v337_v28  ;;  %v436_v30 = vadd.f32 %v432_v25, %v420_v24  ;;  %v1861_v35 = vmul.f32 %v356_v5, %v335_v27  ;;  %v437_v56 = vadd.f32 %v433_v34, %v421_v39 }
 0x15f   : > { %v532_v0 = vmul.f32 %v1794_v46, %v1839_v13 }
 0x160   : > { %v406_v37 = vmul.f32 %v1790_v42, %v1857_v29  ;;  %440 = vrot.lane.b32.xlu1 %v436_v30, %s1679_s9  ;;  %v368_v38 = vpop.permute.xlu1 %367  ;;  %v407_v60 = vmul.f32 %v1790_v42, %v1861_v35  ;;  %v533_v46 = vmul.f32 %v1802_v52, %v1857_v29  ;;  %v534_v15 = vmul.f32 %v1802_v52, %v1861_v35 }
 0x161   : > { %v371_v41 = vsel %vm369_vm2, %v364_v16, %v368_v38  ;;  %v373_v43 = vsel %vm369_vm2, %v368_v38, %v364_v16 }
 0x162   : > { %v1874_v48 = vmul.f32 %v387_v11, %v371_v41  ;;  %v1876_v49 = vmul.f32 %v391_v12, %v373_v43  ;;  %v422_v61 = vadd.f32 %v418_v40, %v406_v37  ;;  %v423_v47 = vadd.f32 %v419_v63, %v407_v60 }
 0x163   : > { %v548_v11 = vadd.f32 %v544_v7, %v532_v0  ;;  %v549_v16 = vadd.f32 %v545_v14, %v533_v46  ;;  %v550_v24 = vadd.f32 %v546_v18, %v534_v15  ;;  %v455_v63 = vsub.s32 2, %v1800_v51 }
 0x164   : > { %444 = vrot.lane.b32.xlu1 %v437_v56, %s1679_s9  ;;  %v434_v62 = vmul.f32 %v1792_v44, %v1874_v48  ;;  %v435_v42 = vmul.f32 %v1792_v44, %v1876_v49  ;;  %v459_v0 = vsub.s32 6, %v1800_v51 }
 0x165   : > { %v553_v2 = vpop.permute.xlu0 %552 }
 0x166   : > { %v559_v5 = vmul.f32 %v553_v2, %v1846_v19  ;;  %v438_v6 = vadd.f32 %v434_v62, %v422_v61  ;;  %v560_v8 = vmul.f32 %v553_v2, %v1848_v20  ;;  %v439_v12 = vadd.f32 %v435_v42, %v423_v47 }
 0x167   : > { %v1681_v61 = vmov 13   ;;  %v1682_v62 = vmov 14   ;;  %v456_v42 = vrot.slane %v1810_v54, %v455_v63 }
 0x168   : > { %v563_v9 = vadd.f32 %v559_v5, %v547_v3  ;;  %442 = vrot.lane.b32.xlu0 %v438_v6, %s1679_s9  ;;  %v564_v44 = vadd.f32 %v560_v8, %v548_v11  ;;  %v582_v5 = vsub.s32 3, %v1800_v51  ;;  %v586_v6 = vsub.s32 7, %v1800_v51 }
 0x16a   : > { %567 = vrot.lane.b32.xlu1 %v563_v9, %s1680_s10  ;;  %v481_v23 = vpop.permute.xlu0 %480  ;;  %v587_v8 = vrot.slane %v1810_v54, %v586_v6  ;;  %v466_v9 = vrot.slane %v456_v42, %v455_v63  ;;  %v1655_v6 = vld [vmem:[%s1743_s27 + $0x14] ss:$8 sps:$4 sm:$0xff]  }
 0x16c   : > { %446 = vrot.lane.b32.xlu0 %v439_v12, %s1679_s9 }
 0x16d   : > { %v557_v50 = vpop.permute.xlu1 %556 }
 0x16e   : > { %v561_v17 = vmul.f32 %v557_v50, %v1874_v48  ;;  %571 = vrot.lane.b32.xlu1 %v564_v44, %s1680_s10  ;;  %v562_v21 = vmul.f32 %v557_v50, %v1876_v49  ;;  %v597_v44 = vrot.slane %v587_v8, %v582_v5 }
 0x16f   : > { %v505_v52 = vpop.permute.xlu0 %504 }
 0x170   : > { %v565_v22 = vadd.f32 %v561_v17, %v549_v16  ;;  %v566_v27 = vadd.f32 %v562_v21, %v550_v24  ;;  %v511_v37 = vmul.f32 %v505_v52, %v1846_v19  ;;  %v512_v38 = vmul.f32 %v505_v52, %v1848_v20 }
 0x172   : > { %619 = vperm.xlu1 %1643, %v1726_v1   ;;  %v477_v25 = vpop.permute.xlu1 %476  ;;  %569 = vrot.lane.b32.xlu0 %v565_v22, %s1680_s10 }
 0x173   : > { %v483_v30 = vmul.f32 %v477_v25, %v1834_v10  ;;  %v484_v31 = vmul.f32 %v477_v25, %v1839_v13  ;;  %v485_v13 = vmul.f32 %v481_v23, %v1857_v29 }
 0x176   : > { %573 = vrot.lane.b32.xlu0 %v566_v27, %s1680_s10  ;;  %623 = vperm.xlu1 %1643, %v1735_v4  }
 0x177   : > { %v489_v28 = vpop.permute.xlu1 %488 }
 0x178   : > { %v495_v55 = vmul.f32 %v489_v28, %v1765_v26  ;;  %v496_v34 = vmul.f32 %v489_v28, %v1769_v32  ;;  %v486_v26 = vmul.f32 %v481_v23, %v1861_v35 }
 0x17a   : > { %v499_v39 = vadd.f32 %v495_v55, %v483_v30  ;;  %v500_v40 = vadd.f32 %v496_v34, %v484_v31  ;;  %611 = vperm.xlu0 %1642, %v1735_v4   ;;  %1645 = vset.pattern.permute.xlu1 %v1681_v61 }
 0x17b   : > { %v493_v41 = vpop.permute.xlu1 %492  ;;  %690 = vperm.xlu1 %1645, %v1735_v4  }
 0x17c   : > { %v515_v43 = vadd.f32 %v511_v37, %v499_v39  ;;  %v516_v45 = vadd.f32 %v512_v38, %v500_v40  ;;  %v497_v56 = vmul.f32 %v493_v41, %v1771_v33  ;;  %v498_v10 = vmul.f32 %v493_v41, %v1777_v36 }
 0x17e   : > { %v501_v32 = vadd.f32 %v497_v56, %v485_v13  ;;  %v502_v19 = vadd.f32 %v498_v10, %v486_v26  ;;  %1644 = vset.pattern.permute.xlu0 %v1681_v61 }
 0x17f   : > { %686 = vperm.xlu0 %1644, %v1726_v1   ;;  %1646 = vset.pattern.permute.xlu1 %v1682_v62 }
 0x180   : > { %v509_v58 = vpop.permute.xlu1 %508  ;;  %698 = vperm.xlu1 %1646, %v1726_v1   ;;  %v460_v1 = vrot.slane %v1810_v54, %v459_v0 }
 0x181   : > { %v513_v20 = vmul.f32 %v509_v58, %v1874_v48  ;;  %v514_v60 = vmul.f32 %v509_v58, %v1876_v49 }
 0x182   : > { %v470_v47 = vrot.slane %v460_v1, %v455_v63 }
 0x183   : > { %v517_v33 = vadd.f32 %v513_v20, %v501_v32  ;;  %v518_v36 = vadd.f32 %v514_v60, %v502_v19  ;;  %1647 = vset.pattern.permute.xlu0 %v1682_v62 }
 0x184   : > { %702 = vperm.xlu0 %1647, %v1735_v4   ;;  %v583_v4 = vrot.slane %v1810_v54, %v582_v5 }
 0x185   : > { %v608_v29 = vpop.permute.xlu1 %607 }
 0x186   : > { %v593_v14 = vrot.slane %v583_v4, %v582_v5  ;;  %v1653_v5 = vld [vmem:[%s1743_s27 + $0x10] ss:$8 sps:$4 sm:$0xff]  }
 0x1d2   : > { %v441_v35 = vpop.permute.xlu1 %440 }
 0x1d6   : > { %v445_v49 = vpop.permute.xlu1 %444 }
 0x1d7   : > { %v449_v11 = vsel %vm448_vm3, %v441_v35, %v445_v49  ;;  %v451_v12 = vsel %vm448_vm3, %v445_v49, %v441_v35  ;;  %v1652_v49 = vld [vmem:[%s1743_s27 + $0x4] ss:$8 sps:$4 sm:$0xff]  }
 0x1d8   : > { %v471_v21 = vmul.f32 %v466_v9, %v451_v12  ;;  %v472_v22 = vmul.f32 %v470_v47, %v449_v11 }
 0x1da   : > { %v443_v48 = vpop.permute.xlu0 %442  ;;  %v519_v28 = vadd.f32 %v515_v43, %v471_v21  ;;  %v520_v57 = vadd.f32 %v516_v45, %v472_v22 }
 0x1dc   : > { %v568_v3 = vpop.permute.xlu1 %567 }
 0x1de   : > { %v447_v2 = vpop.permute.xlu0 %446 }
 0x1df   : > { %v450_v15 = vsel %vm448_vm3, %v443_v48, %v447_v2  ;;  %v452_v16 = vsel %vm448_vm3, %v447_v2, %v443_v48  ;;  %v1650_v48 = vld [vmem:[%s1743_s27] ss:$8 sps:$4 sm:$0xff]   ;;  %v1684_v2 = vmov 1983009808  }
 0x1e0   : > { %v572_v46 = vpop.permute.xlu1 %571  ;;  %v473_v25 = vmul.f32 %v466_v9, %v452_v16  ;;  %v474_v54 = vmul.f32 %v470_v47, %v450_v15 }
 0x1e1   : > { %v576_v17 = vsel %vm575_vm4, %v568_v3, %v572_v46  ;;  %v578_v18 = vsel %vm575_vm4, %v572_v46, %v568_v3  ;;  %v1308_v3 = vunpack.c.l.s4 %v1684_v2 }
 0x1e2   : > { %v598_v27 = vmul.f32 %v593_v14, %v576_v17  ;;  %v599_v52 = vmul.f32 %v597_v44, %v578_v18  ;;  %v521_v55 = vadd.f32 %v517_v33, %v473_v25  ;;  %v522_v34 = vadd.f32 %v518_v36, %v474_v54  ;;  %v1649_v33 = vld [vmem:[%s2287_s2] sm:$0xff]  }
 0x1e3   : > { %v1683_v36 = vmov 1966171168   ;;  %v1309_v4 = vunpack.c.0.s8 %v1308_v3 }
 0x1e4   : > { %v570_v7 = vpop.permute.xlu0 %569  ;;  %v602_v37 = vadd.f32 %v598_v27, %v519_v28  ;;  %v603_v38 = vadd.f32 %v599_v52, %v520_v57  ;;  %v720_v62 = vunpack.c.l.s4 %v1683_v36 }
 0x1e6   : > { %v614_v10 = vmul.f32 %v608_v29, %v602_v37  ;;  %v615_v13 = vmul.f32 %v608_v29, %v603_v38  ;;  %v721_v29 = vunpack.c.0.s8 %v720_v62 }
 0x1e8   : > { %v574_v50 = vpop.permute.xlu0 %573  ;;  %v1941_v35 = vsub.s32 %v721_v29, %v1800_v51 }
 0x1e9   : > { %v577_v23 = vsel %vm575_vm4, %v570_v7, %v574_v50  ;;  %v579_v24 = vsel %vm575_vm4, %v574_v50, %v570_v7 }
 0x1ea   : > { %v600_v30 = vmul.f32 %v593_v14, %v577_v23  ;;  %v601_v31 = vmul.f32 %v597_v44, %v579_v24  ;;  %v725_v63 = vrot.slane %v1650_v48, %v1941_v35  ;;  %v732_v0 = vrot.slane %v1652_v49, %v1941_v35 }
 0x1eb   : > { %v775_v9 = vrot.slane %v1653_v5, %v1941_v35  ;;  %v782_v47 = vrot.slane %v1655_v6, %v1941_v35  ;;  %v1968_v44 = vsub.s32 %v1309_v4, %v1800_v51 }
 0x1ec   : > { %v604_v40 = vadd.f32 %v600_v30, %v521_v55  ;;  %v605_v41 = vadd.f32 %v601_v31, %v522_v34  ;;  %v733_v42 = vcombine.high %v725_v63, %v725_v63  ;;  %v734_v1 = vcombine.high %v732_v0, %v732_v0 }
 0x1ed   : > { %v620_v39 = vpop.permute.xlu1 %619  ;;  %v1950_v7 = vrot.slane %v725_v63, %v1941_v35  ;;  %v1955_v46 = vrot.slane %v732_v0, %v1941_v35  ;;  %v783_v15 = vcombine.high %v775_v9, %v775_v9  ;;  %v784_v16 = vcombine.high %v782_v47, %v782_v47 }
 0x1ee   : > { %v626_v19 = vadd.f32 %v620_v39, %v614_v10  ;;  %v627_v43 = vadd.f32 %v620_v39, %v615_v13  ;;  %v1958_v11 = vrot.slane %v733_v42, %v1941_v35  ;;  %v1961_v12 = vrot.slane %v734_v1, %v1941_v35 }
 0x1ef   : > { %v1965_v14 = vcombine.high %v1950_v7, %v1950_v7  ;;  %v1972_v17 = vcombine.high %v1955_v46, %v1955_v46  ;;  %v924_v22 = vrot.slane %v1950_v7, %v1805_v53  ;;  %v928_v24 = vrot.slane %v1950_v7, %v1820_v59 }
 0x1f0   : > { %v1976_v18 = vcombine.high %v1958_v11, %v1958_v11  ;;  %v1980_v21 = vcombine.high %v1961_v12, %v1961_v12  ;;  %v932_v25 = vrot.slane %v1958_v11, %v1805_v53  ;;  %v956_v54 = vrot.slane %v1955_v46, %v1805_v53 }
 0x1f1   : > { %v624_v58 = vpop.permute.xlu1 %623  ;;  %v960_v27 = vrot.slane %v1955_v46, %v1820_v59  ;;  %v936_v28 = vrot.slane %v1958_v11, %v1820_v59  ;;  %v940_v57 = vrot.slane %v1965_v14, %v1805_v53  ;;  %v944_v30 = vrot.slane %v1965_v14, %v1820_v59 }
 0x1f2   : > { %v1999_v55 = vrot.slane %v775_v9, %v1941_v35  ;;  %v2002_v34 = vrot.slane %v782_v47, %v1941_v35  ;;  %v2005_v37 = vrot.slane %v783_v15, %v1941_v35  ;;  %v2008_v38 = vrot.slane %v784_v16, %v1941_v35 }
 0x1f3   : > { %v964_v10 = vrot.slane %v1961_v12, %v1805_v53  ;;  %v968_v13 = vrot.slane %v1961_v12, %v1820_v59 }
 0x1f4   : > { %v2032_v36 = vcombine.high %v2002_v34, %v2002_v34  ;;  %v2036_v62 = vcombine.high %v2005_v37, %v2005_v37  ;;  %v2040_v29 = vcombine.high %v2008_v38, %v2008_v38  ;;  %v988_v0 = vrot.slane %v1999_v55, %v1805_v53 }
 0x1f5   : > { %v612_v56 = vpop.permute.xlu0 %611  ;;  %v992_v3 = vrot.slane %v1999_v55, %v1820_v59  ;;  %v1000_v9 = vrot.slane %v2005_v37, %v1820_v59 }
 0x1f6   : > { %v616_v26 = vmul.f32 %v612_v56, %v604_v40  ;;  %v617_v32 = vmul.f32 %v612_v56, %v605_v41  ;;  %v691_v8 = vpop.permute.xlu1 %690  ;;  %v948_v41 = vrot.slane %v1976_v18, %v1805_v53  ;;  %v952_v56 = vrot.slane %v1976_v18, %v1820_v59 }
 0x1f8   : > { %v629_v45 = vadd.f32 %v624_v58, %v617_v32  ;;  %v628_v20 = vadd.f32 %v624_v58, %v616_v26  ;;  %v972_v26 = vrot.slane %v1972_v17, %v1805_v53  ;;  %v976_v32 = vrot.slane %v1972_v17, %v1820_v59 }
 0x1fa   : > { %v633_v60 = vpack.c.bf16 %v629_v45, %v627_v43  ;;  %v632_v61 = vpack.c.bf16 %v628_v20, %v626_v19  ;;  %v687_v50 = vpop.permute.xlu0 %686  ;;  %v980_v43 = vrot.slane %v1980_v21, %v1805_v53  ;;  %v984_v45 = vrot.slane %v1980_v21, %v1820_v59 }
 0x1fb   : > { %v699_v23 = vpop.permute.xlu1 %698 }
 0x1fc   : > { %656 = vmatprep.subr.bf16.mxu1 %v633_v60 }
 0x1fd   : > { %657 = vmatpush1.bf16.msra.mxu1 %v632_v61 }
 0x1ff   : > { %v703_v60 = vpop.permute.xlu0 %702 }
 0x200   : > { %1589 = vmatmul.mubr.msk.bf16.vlgmr.msra.gmra.mxu1 %vm246_vm0, %v1649_v33  ;;  %v2028_v33 = vcombine.high %v1999_v55, %v1999_v55 }
 0x202   : > { %v1004_v47 = vrot.slane %v2028_v33, %v1805_v53  ;;  %v2291_v55 = vrot.slane %v2028_v33, %v1820_v59  ;;  %v2295_v33 = vrot.slane %v2002_v34, %v1820_v59 }
 0x2c0   : > { %v676_v51 = vpop.f32.mrf.mxu1 }
 0x2c1   : > { %v693_v52 = vmul.f32 %v687_v50, %v676_v51 }
 0x2c2   : > { %v678_v31 = vpop.f32.mrf.mxu1 }
 0x2c3   : > { %v705_v39 = vadd.f32 %v699_v23, %v693_v52  ;;  %v694_v40 = vmul.f32 %v687_v50, %v678_v31 }
 0x2c4   : > { %v680_v58 = vpop.f32.mrf.mxu1 }
 0x2c5   : > { %v706_v19 = vadd.f32 %v699_v23, %v694_v40  ;;  %v695_v20 = vmul.f32 %v691_v8, %v680_v58  ;;  %v709_v48 = vmax.f32 %v705_v39, 0.0 }
 0x2c6   : > { %v682_v61 = vpop.f32.mrf.mxu1 }
 0x2c7   : > { %v710_v49 = vmax.f32 %v706_v19, 0.0  ;;  %v696_v63 = vmul.f32 %v691_v8, %v682_v61  ;;  %v707_v2 = vadd.f32 %v703_v60, %v695_v20  ;;  %v996_v8 = vrot.slane %v2005_v37, %v1805_v53 }
 0x2c8   : > { %v2293_v37 = vrot.slane %v2036_v62, %v1820_v59 }
 0x2c9   : > { %v821_v42 = vcombine.low %v709_v48, %v710_v49  ;;  %v822_v1 = vcombine.high %v709_v48, %v710_v49  ;;  %v708_v4 = vadd.f32 %v703_v60, %v696_v63  ;;  %v711_v31 = vmax.f32 %v707_v2, 0.0 }
 0x2cb   : > { %v829_v16 = vrot.slane %v821_v42, %v1941_v35  ;;  %v836_v51 = vrot.slane %v822_v1, %v1941_v35  ;;  %v712_v23 = vmax.f32 %v708_v4, 0.0 }
 0x2cd   : > { %v837_v19 = vcombine.high %v829_v16, %v829_v16  ;;  %v838_v20 = vcombine.high %v836_v51, %v836_v51  ;;  %v845_v60 = vrot.slane %v829_v16, %v1941_v35  ;;  %v852_v61 = vrot.slane %v836_v51, %v1941_v35 }
 0x2ce   : > { %v871_v48 = vcombine.low %v711_v31, %v712_v23  ;;  %v872_v49 = vcombine.high %v711_v31, %v712_v23 }
 0x2cf   : > { %v859_v42 = vrot.slane %v837_v19, %v1941_v35  ;;  %v866_v1 = vrot.slane %v838_v20, %v1941_v35  ;;  %v867_v4 = vcombine.high %v845_v60, %v845_v60  ;;  %v868_v58 = vcombine.high %v852_v61, %v852_v61 }
 0x2d0   : > { %v1084_v40 = vrot.slane %v845_v60, %v1805_v53  ;;  %v1088_v16 = vrot.slane %v845_v60, %v1820_v59  ;;  %v1116_v51 = vrot.slane %v852_v61, %v1805_v53  ;;  %v1120_v23 = vrot.slane %v852_v61, %v1820_v59 }
 0x2d1   : > { %v869_v31 = vcombine.high %v859_v42, %v859_v42  ;;  %v870_v39 = vcombine.high %v866_v1, %v866_v1  ;;  %v1092_v63 = vrot.slane %v859_v42, %v1805_v53  ;;  %v1096_v2 = vrot.slane %v859_v42, %v1820_v59 }
 0x2d2   : > { %v1100_v19 = vrot.slane %v867_v4, %v1805_v53  ;;  %v1104_v20 = vrot.slane %v867_v4, %v1820_v59  ;;  %v1124_v6 = vrot.slane %v866_v1, %v1805_v53  ;;  %v1128_v5 = vrot.slane %v866_v1, %v1820_v59 }
 0x2d3   : > { %v1108_v60 = vrot.slane %v869_v31, %v1805_v53  ;;  %v1112_v52 = vrot.slane %v869_v31, %v1820_v59  ;;  %v1132_v61 = vrot.slane %v868_v58, %v1805_v53  ;;  %v1136_v15 = vrot.slane %v868_v58, %v1820_v59 }
 0x2d4   : > { %v1140_v50 = vrot.slane %v870_v39, %v1805_v53  ;;  %v1144_v42 = vrot.slane %v870_v39, %v1820_v59  ;;  %v1242_v4 = vsel %vm1241_vm5, %v924_v22, %v1084_v40  ;;  %v1243_v1 = vsel %vm1241_vm5, %v928_v24, %v1088_v16 }
 0x2d5   : > { %v1244_v31 = vsel %vm1241_vm5, %v932_v25, %v1092_v63  ;;  %v1245_v39 = vsel %vm1241_vm5, %v936_v28, %v1096_v2  ;;  %v1246_v22 = vsel %vm1241_vm5, %v940_v57, %v1100_v19  ;;  %v1247_v7 = vsel %vm1241_vm5, %v944_v30, %v1104_v20 }
 0x2d6   : > { %v1248_v24 = vsel %vm1241_vm5, %v948_v41, %v1108_v60  ;;  %v1249_v11 = vsel %vm1241_vm5, %v952_v56, %v1112_v52  ;;  %v1250_v25 = vsel %vm1241_vm5, %v956_v54, %v1116_v51  ;;  %v1251_v14 = vsel %vm1241_vm5, %v960_v27, %v1120_v23 }
 0x2d7   : > { %v1252_v28 = vsel %vm1241_vm5, %v964_v10, %v1124_v6  ;;  %v1253_v18 = vsel %vm1241_vm5, %v968_v13, %v1128_v5  ;;  %v1254_v54 = vsel %vm1241_vm5, %v972_v26, %v1132_v61  ;;  %v1255_v46 = vsel %vm1241_vm5, %v976_v32, %v1136_v15 }
 0x2d8   : > { %v1256_v27 = vsel %vm1241_vm5, %v980_v43, %v1140_v50  ;;  %v1257_v12 = vsel %vm1241_vm5, %v984_v45, %v1144_v42  ;;  %v1306_v57 = vcombine.low %v1242_v4, %v1243_v1  ;;  %v1314_v30 = vcombine.low %v1244_v31, %v1245_v39 }
 0x2d9   : > { %v1322_v41 = vcombine.low %v1246_v22, %v1247_v7  ;;  %v1330_v56 = vcombine.low %v1248_v24, %v1249_v11  ;;  %v1338_v10 = vcombine.low %v1250_v25, %v1251_v14  ;;  %v1346_v13 = vcombine.low %v1252_v28, %v1253_v18 }
 0x2da   : > { %v1313_v17 = vrot.slane %v1306_v57, %v1968_v44  ;;  %v1321_v26 = vrot.slane %v1314_v30, %v1968_v44  ;;  %v1354_v32 = vcombine.low %v1254_v54, %v1255_v46  ;;  %v1362_v5 = vcombine.low %v1256_v27, %v1257_v12 }
 0x2db   : > { %v1329_v6 = vrot.slane %v1322_v41, %v1968_v44  ;;  %v1337_v43 = vrot.slane %v1330_v56, %v1968_v44  ;;  %v1345_v21 = vrot.slane %v1338_v10, %v1968_v44  ;;  %v1353_v45 = vrot.slane %v1346_v13, %v1968_v44 }
 0x2dc   : > { %v1361_v50 = vrot.slane %v1354_v32, %v1968_v44  ;;  %v1369_v15 = vrot.slane %v1362_v5, %v1968_v44  ;;  %v1434_v52 = vcombine.low %v1313_v17, %v1321_v26  ;;  %v879_v40 = vrot.slane %v871_v48, %v1941_v35 }
 0x2dd   : > { %v1435_v58 = vcombine.low %v1329_v6, %v1337_v43  ;;  %v1452_v63 = vcombine.low %v1345_v21, %v1353_v45  ;;  %v886_v2 = vrot.slane %v872_v49, %v1941_v35  ;;  %v1048_v16 = vrot.slane %v2040_v29, %v1820_v59 }
 0x2de   : > { %v1442_v51 = vrot.slane %v1434_v52, %v1968_v44  ;;  %v1453_v23 = vcombine.low %v1361_v50, %v1369_v15  ;;  %v887_v19 = vcombine.high %v879_v40, %v879_v40  ;;  %v895_v20 = vrot.slane %v879_v40, %v1941_v35 }
 0x2df   : > { %v1449_v60 = vrot.slane %v1435_v58, %v1968_v44  ;;  %v1460_v61 = vrot.slane %v1452_v63, %v1968_v44  ;;  %v888_v42 = vcombine.high %v886_v2, %v886_v2  ;;  %v902_v48 = vrot.slane %v886_v2, %v1941_v35 }
 0x2e0   : > { %v1467_v49 = vrot.slane %v1453_v23, %v1968_v44  ;;  %v909_v4 = vrot.slane %v887_v19, %v1941_v35  ;;  %v917_v1 = vcombine.high %v895_v20, %v895_v20  ;;  %v1148_v31 = vrot.slane %v895_v20, %v1805_v53 }
 0x2e1   : > { %v1450_v39 = vcombine.low %v1442_v51, %v1449_v60  ;;  %v1451_v22 = vcombine.high %v1442_v51, %v1449_v60  ;;  %v916_v7 = vrot.slane %v888_v42, %v1941_v35  ;;  %v918_v24 = vcombine.high %v902_v48, %v902_v48 }
 0x2e2   : > { %v1468_v11 = vcombine.low %v1460_v61, %v1467_v49  ;;  %v1469_v25 = vcombine.high %v1460_v61, %v1467_v49  ;;  %v919_v14 = vcombine.high %v909_v4, %v909_v4  ;;  %v1152_v28 = vrot.slane %v895_v20, %v1820_v59 }
 0x2e3   : > { %1514 = vst [vmem:[%s2180_s15] sm:$0xff] %v1450_v39  ;;  %1515 = vst [vmem:[%s2180_s15 + $0x8] sm:$0xff] %v1451_v22  ;;  %v920_v18 = vcombine.high %v916_v7, %v916_v7  ;;  %v1156_v54 = vrot.slane %v909_v4, %v1805_v53  ;;  %v1160_v46 = vrot.slane %v909_v4, %v1820_v59 }
 0x2e4   : > { %v1164_v27 = vrot.slane %v917_v1, %v1805_v53  ;;  %1516 = vst [vmem:[%s2180_s15 + $0x10] sm:$0xff] %v1468_v11  ;;  %1517 = vst [vmem:[%s2180_s15 + $0x18] sm:$0xff] %v1469_v25  ;;  %v1168_v12 = vrot.slane %v917_v1, %v1820_v59  ;;  %v1172_v35 = vrot.slane %v919_v14, %v1805_v53 }
 0x2e5   : > { %v1176_v57 = vrot.slane %v919_v14, %v1820_v59  ;;  %v1180_v30 = vrot.slane %v902_v48, %v1805_v53  ;;  %v1184_v41 = vrot.slane %v902_v48, %v1820_v59  ;;  %v1188_v56 = vrot.slane %v916_v7, %v1805_v53 }
 0x2e6   : > { %v1192_v10 = vrot.slane %v916_v7, %v1820_v59  ;;  %v1196_v13 = vrot.slane %v918_v24, %v1805_v53  ;;  %v1200_v17 = vrot.slane %v918_v24, %v1820_v59  ;;  %v1204_v26 = vrot.slane %v920_v18, %v1805_v53 }
 0x2e7   : > { %v1208_v32 = vrot.slane %v920_v18, %v1820_v59  ;;  %v1258_v5 = vsel %vm1241_vm5, %v988_v0, %v1148_v31  ;;  %v1259_v6 = vsel %vm1241_vm5, %v992_v3, %v1152_v28  ;;  %v1260_v43 = vsel %vm1241_vm5, %v996_v8, %v1156_v54 }
 0x2e8   : > { %v1261_v21 = vsel %vm1241_vm5, %v1000_v9, %v1160_v46  ;;  %v1262_v0 = vsel %vm1241_vm5, %v1004_v47, %v1164_v27  ;;  %v1263_v3 = vsel %vm1241_vm5, %v2291_v55, %v1168_v12  ;;  %v2292_v45 = vrot.slane %v2036_v62, %v1805_v53 }
 0x2e9   : > { %v1265_v9 = vsel %vm1241_vm5, %v2293_v37, %v1176_v57  ;;  %v2294_v50 = vrot.slane %v2002_v34, %v1805_v53  ;;  %v1267_v15 = vsel %vm1241_vm5, %v2295_v33, %v1184_v41  ;;  %v2296_v52 = vrot.slane %v2008_v38, %v1805_v53 }
 0x2ea   : > { %v1264_v8 = vsel %vm1241_vm5, %v2292_v45, %v1172_v35  ;;  %v2297_v62 = vrot.slane %v2008_v38, %v1820_v59  ;;  %v2298_v63 = vrot.slane %v2032_v36, %v1805_v53  ;;  %v2299_v34 = vrot.slane %v2032_v36, %v1820_v59 }
 0x2eb   : > { %v1266_v47 = vsel %vm1241_vm5, %v2294_v50, %v1180_v30  ;;  %v1268_v40 = vsel %vm1241_vm5, %v2296_v52, %v1188_v56  ;;  %v2300_v23 = vrot.slane %v2040_v29, %v1805_v53  ;;  %v1273_v20 = vsel %vm1241_vm5, %v1048_v16, %v1208_v32 }
 0x2ec   : > { %v1269_v58 = vsel %vm1241_vm5, %v2297_v62, %v1192_v10  ;;  %v1270_v2 = vsel %vm1241_vm5, %v2298_v63, %v1196_v13  ;;  %v1271_v51 = vsel %vm1241_vm5, %v2299_v34, %v1200_v17  ;;  %v1370_v38 = vcombine.low %v1258_v5, %v1259_v6 }
 0x2ed   : > { %v1272_v19 = vsel %vm1241_vm5, %v2300_v23, %v1204_v26  ;;  %v1378_v60 = vcombine.low %v1260_v43, %v1261_v21  ;;  %v1386_v61 = vcombine.low %v1262_v0, %v1263_v3  ;;  %v1394_v42 = vcombine.low %v1264_v8, %v1265_v9 }
 0x2ee   : > { %v1402_v48 = vcombine.low %v1266_v47, %v1267_v15  ;;  %v1410_v49 = vcombine.low %v1268_v40, %v1269_v58  ;;  %v1418_v4 = vcombine.low %v1270_v2, %v1271_v51  ;;  %v1426_v1 = vcombine.low %v1272_v19, %v1273_v20 }
 0x2ef   : > { %v1377_v31 = vrot.slane %v1370_v38, %v1968_v44  ;;  %v1385_v59 = vrot.slane %v1378_v60, %v1968_v44  ;;  %v1393_v36 = vrot.slane %v1386_v61, %v1968_v44  ;;  %v1401_v53 = vrot.slane %v1394_v42, %v1968_v44 }
 0x2f0   : > { %v1409_v29 = vrot.slane %v1402_v48, %v1968_v44  ;;  %v1417_v16 = vrot.slane %v1410_v49, %v1968_v44  ;;  %v1425_v39 = vrot.slane %v1418_v4, %v1968_v44  ;;  %v1433_v22 = vrot.slane %v1426_v1, %v1968_v44 }
 0x2f1   : > { %v1470_v7 = vcombine.low %v1377_v31, %v1385_v59  ;;  %v1471_v24 = vcombine.low %v1393_v36, %v1401_v53 }
 0x2f2   : > { %v1488_v11 = vcombine.low %v1409_v29, %v1417_v16  ;;  %v1489_v25 = vcombine.low %v1425_v39, %v1433_v22 }
 0x2f3   : > { %v1478_v14 = vrot.slane %v1470_v7, %v1968_v44  ;;  %v1485_v28 = vrot.slane %v1471_v24, %v1968_v44 }
 0x2f4   : > { %v1496_v18 = vrot.slane %v1488_v11, %v1968_v44  ;;  %v1503_v54 = vrot.slane %v1489_v25, %v1968_v44 }
 0x2f5   : > { %v1486_v46 = vcombine.low %v1478_v14, %v1485_v28  ;;  %v1487_v27 = vcombine.high %v1478_v14, %v1485_v28 }
 0x2f6   : > { %v1504_v12 = vcombine.low %v1496_v18, %v1503_v54  ;;  %v1505_v35 = vcombine.high %v1496_v18, %v1503_v54 }
 0x2f7   : > { %1518 = vst [vmem:[%s2180_s15 + $0x20] sm:$0xff] %v1486_v46  ;;  %1519 = vst [vmem:[%s2180_s15 + $0x28] sm:$0xff] %v1487_v27 }
 0x2f8   : > { %1520 = vst [vmem:[%s2180_s15 + $0x30] sm:$0xff] %v1504_v12  ;;  %1521 = vst [vmem:[%s2180_s15 + $0x38] sm:$0xff] %v1505_v35 }
 0x2f9 PF: > { %s15_s18 = sadd.s32 1, %s1662_s18  }
 0x2fa   : > { %p12_p4 = scmp.ge.s32.totalorder %s15_s18, 4  }
 0x2fc   :  { %14 = sbr.rel (!%p12_p4) target bundleno = 1 (0x1), region = 70 }

</bundles_post_ra>
